<compile_context>
chip_gen: v7x
topology: tpu7x:2x2x1
jax: 0.10.0
libtpu: 0.0.40
codegen_flags: <defaults>
</compile_context>

<pallas_src>
import functools

import jax
import jax.numpy as jnp
from jax.experimental import pallas as pl
from jax.experimental.pallas import tpu as pltpu


def _lightconv_kernel(x_ref, w_ref, o_ref, xpad_ref, *, padding_l):
    """One lane-tile of the lightweight convolution.

    x_ref   : (T, Nc)       input tile (time on sublanes, flattened B*C on lanes)
    w_ref   : (K, Nc)       per-lane-column kernel weights (f32)
    o_ref   : (T, Nc)       output tile
    xpad_ref: (T+K-1, Nc)   f32 VMEM halo buffer (zero halo rows, interior = x)
    """
    T = o_ref.shape[0]
    Nc = o_ref.shape[1]
    K = w_ref.shape[0]
    pad_r = K - 1 - padding_l

    # In-kernel zero padding: halo rows are only K-1 rows -> trivially cheap to
    # (re)zero every step (and safe under megacore grid partitioning).
    if padding_l > 0:
        xpad_ref[:padding_l, :] = jnp.zeros((padding_l, Nc), xpad_ref.dtype)
    if pad_r > 0:
        xpad_ref[padding_l + T:, :] = jnp.zeros((pad_r, Nc), xpad_ref.dtype)

    # Copy the tile into the interior of the halo buffer (upcast to f32 once).
    xpad_ref[padding_l:padding_l + T, :] = x_ref[...].astype(jnp.float32)

    # Shifted multiply-accumulate; K is small & static -> fully unrolled VPU work.
    # Windows are read from the VMEM halo ref; the accumulator stays in vregs.
    acc = w_ref[0:1, :].astype(jnp.float32) * xpad_ref[0:T, :]
    for k in range(1, K):
        acc = acc + w_ref[k:k + 1, :].astype(jnp.float32) * xpad_ref[k:k + T, :]

    o_ref[...] = acc.astype(o_ref.dtype)


def _choose_lane_tile(N, per_col_bytes, budget_bytes):
    """Largest multiple-of-128 lane tile dividing N that fits the VMEM budget."""
    if N % 128 != 0:
        return N  # ragged lane extent: must use the full dim (BlockSpec rule)
    max_cols = max(128, budget_bytes // per_col_bytes)
    if N <= max_cols:
        return N
    best = 128
    cand = 256
    while cand <= max_cols:
        if N % cand == 0:
            best = cand
        cand += 128
    return best


def lightconv_forward(x_tbc, weight, *, padding_l, num_heads, weight_softmax=True):
    """JAX/Pallas equivalent of LightconvLayer.forward (incremental_state=None).

    x_tbc : (T, B, C)
    weight: (H, K)
    returns (T, B, C)
    """
    T, B, C = x_tbc.shape
    H, K = weight.shape
    assert H == num_heads and C % H == 0
    R = C // H
    assert 0 <= padding_l <= K - 1, "padding_l must be in [0, K-1]"

    # Softmax in f32 (matches F.softmax(weight, -1)).
    w = weight.astype(jnp.float32)
    if weight_softmax:
        w = jax.nn.softmax(w, axis=-1)

    # Per-lane-column weights for the flattened axis n = b*C + c (head = (n%C)//R).
    # Tiny array -> negligible HBM cost, keeps the kernel a pure broadcast-MAC.
    w_kc = jnp.repeat(w, R, axis=0).T           # (K, C)
    w_kn = jnp.tile(w_kc, (1, B))               # (K, B*C)

    # No transposes: collapse the two trailing dims (layout-preserving reshape).
    N = B * C
    x2d = x_tbc.reshape(T, N)

    in_isz = x2d.dtype.itemsize
    out_isz = x_tbc.dtype.itemsize
    # Live VMEM per lane column: double-buffered in/out/w blocks + halo scratch.
    per_col = (2 * T * in_isz) + (2 * T * out_isz) + (2 * K * 4) \
        + (T + K - 1) * 4
    Nc = _choose_lane_tile(N, per_col, budget_bytes=24 * 1024 * 1024)

    kernel = functools.partial(_lightconv_kernel, padding_l=padding_l)
    out2d = pl.pallas_call(
        kernel,
        out_shape=jax.ShapeDtypeStruct((T, N), x_tbc.dtype),
        grid=(N // Nc,),
        in_specs=[
            pl.BlockSpec((T, Nc), lambda j: (0, j)),
            pl.BlockSpec((K, Nc), lambda j: (0, j)),
        ],
        out_specs=pl.BlockSpec((T, Nc), lambda j: (0, j)),
        scratch_shapes=[
            pltpu.VMEM((T + K - 1, Nc), jnp.float32),   # halo-padded input
        ],
        compiler_params=pltpu.CompilerParams(
            dimension_semantics=("parallel",),
            vmem_limit_bytes=48 * 1024 * 1024,
        ),
        cost_estimate=pl.CostEstimate(
            flops=2 * T * N * K,
            transcendentals=0,
            bytes_accessed=T * N * (in_isz + out_isz) + K * N * 4,
        ),
    )(x2d, w_kn)

    return out2d.reshape(T, B, C)


def _reference(x_tbc, weight, *, padding_l, num_heads, weight_softmax=True):
    """Pure-JAX reference mirroring fairseq's unfold1d-based lightweight conv."""
    T, B, C = x_tbc.shape
    H, K = weight.shape
    R = C // H
    w = jax.nn.softmax(weight.astype(jnp.float32), -1) if weight_softmax else weight
    xp = jnp.pad(x_tbc, ((padding_l, K - 1 - padding_l), (0, 0), (0, 0)))
    x_unf = jnp.stack([xp[k:k + T] for k in range(K)], axis=-1)   # (T, B, C, K)
    w_exp = jnp.repeat(w, R, axis=0)                              # (C, K)
    return jnp.einsum("tbck,ck->tbc", x_unf, w_exp).astype(x_tbc.dtype)


if __name__ == "__main__":
    key = jax.random.PRNGKey(0)

    # Config 1: input_size=32, kernel_size=3, padding_l=2 (causal), num_heads=4,
    #           weight_softmax=True, bias=False.
    T, B, C, H, K = 16, 2, 32, 4, 3
    padding_l = K - 1
    kx, kw, key = jax.random.split(key, 3)
    x = jax.random.normal(kx, (T, B, C), dtype=jnp.float32)
    bound = (6.0 / (H + K)) ** 0.5  # xavier_uniform_ on (H, K)
    weight = jax.random.uniform(kw, (H, K), dtype=jnp.float32,
                                minval=-bound, maxval=bound)

    run = jax.jit(functools.partial(lightconv_forward, padding_l=padding_l,
                                    num_heads=H, weight_softmax=True))
    out = run(x, weight)
    jax.block_until_ready(out)
    ref = _reference(x, weight, padding_l=padding_l, num_heads=H,
                     weight_softmax=True)
    assert out.shape == (T, B, C)
    assert jnp.allclose(out, ref, atol=1e-5, rtol=1e-5), "mismatch vs reference (cfg1)"

    # Config 2: two-sided padding (padding_l=1), lane axis a multiple of 128.
    T2, B2, C2, H2, K2 = 48, 4, 128, 8, 3
    padding_l2 = 1
    kx2, kw2, key = jax.random.split(key, 3)
    x2 = jax.random.normal(kx2, (T2, B2, C2), dtype=jnp.float32)
    bound2 = (6.0 / (H2 + K2)) ** 0.5
    weight2 = jax.random.uniform(kw2, (H2, K2), dtype=jnp.float32,
                                 minval=-bound2, maxval=bound2)
    run2 = jax.jit(functools.partial(lightconv_forward, padding_l=padding_l2,
                                     num_heads=H2, weight_softmax=True))
    out2 = run2(x2, weight2)
    jax.block_until_ready(out2)
    ref2 = _reference(x2, weight2, padding_l=padding_l2, num_heads=H2,
                      weight_softmax=True)
    assert jnp.allclose(out2, ref2, atol=1e-5, rtol=1e-5), "mismatch vs reference (cfg2)"

    print("KERNEL_OK")
</pallas_src>

<mosaic_0001>
module attributes {stable_mosaic.version = 11 : i64} {
  func.func @_lightconv_kernel(%arg0: i32, %arg1: memref<16x64xf32, #tpu.memory_space<vmem>>, %arg2: memref<3x64xf32, #tpu.memory_space<vmem>>, %arg3: memref<16x64xf32, #tpu.memory_space<vmem>>, %arg4: memref<18x64xf32, #tpu.memory_space<vmem>>) attributes {dimension_semantics = [#tpu.dimension_semantics<parallel>], iteration_bounds = array<i64: 1>, scalar_prefetch = 0 : i64, scratch_operands = 1 : i64, tpu.core_type = #tpu.core_type<tc>, window_params = [{transform_indices = @transform_0, window_bounds = array<i64: 16, 64>}, {transform_indices = @transform_1, window_bounds = array<i64: 3, 64>}, {transform_indices = @transform_2, window_bounds = array<i64: 16, 64>}]} {
    %cst = arith.constant 0.000000e+00 : f32
    %0 = vector.broadcast %cst : f32 to vector<2x64xf32>
    %c0 = arith.constant 0 : index
    %c0_0 = arith.constant 0 : index
    %1 = vector.load %arg4[%c0, %c0_0] : memref<18x64xf32, #tpu.memory_space<vmem>>, vector<2x64xf32>
    tpu.vector_store %arg4[%c0, %c0_0], %0 {strides = array<i32>} : memref<18x64xf32, #tpu.memory_space<vmem>>, vector<2x64xf32>,
    %c0_1 = arith.constant 0 : index
    %c0_2 = arith.constant 0 : index
    %2 = vector.load %arg1[%c0_1, %c0_2] : memref<16x64xf32, #tpu.memory_space<vmem>>, vector<16x64xf32>
    %c2 = arith.constant 2 : index
    %c0_3 = arith.constant 0 : index
    %3 = vector.load %arg4[%c2, %c0_3] : memref<18x64xf32, #tpu.memory_space<vmem>>, vector<16x64xf32>
    tpu.vector_store %arg4[%c2, %c0_3], %2 {strides = array<i32>} : memref<18x64xf32, #tpu.memory_space<vmem>>, vector<16x64xf32>,
    %c0_4 = arith.constant 0 : index
    %c0_5 = arith.constant 0 : index
    %4 = vector.load %arg2[%c0_4, %c0_5] : memref<3x64xf32, #tpu.memory_space<vmem>>, vector<1x64xf32>
    %c0_6 = arith.constant 0 : index
    %c0_7 = arith.constant 0 : index
    %5 = vector.load %arg4[%c0_6, %c0_7] : memref<18x64xf32, #tpu.memory_space<vmem>>, vector<16x64xf32>
    %6 = vector.broadcast %4 : vector<1x64xf32> to vector<16x64xf32>
    %7 = arith.mulf %6, %5 : vector<16x64xf32>
    %c1 = arith.constant 1 : index
    %c0_8 = arith.constant 0 : index
    %8 = vector.load %arg2[%c1, %c0_8] : memref<3x64xf32, #tpu.memory_space<vmem>>, vector<1x64xf32>
    %c1_9 = arith.constant 1 : index
    %c0_10 = arith.constant 0 : index
    %9 = vector.load %arg4[%c1_9, %c0_10] : memref<18x64xf32, #tpu.memory_space<vmem>>, vector<16x64xf32>
    %10 = vector.broadcast %8 : vector<1x64xf32> to vector<16x64xf32>
    %11 = arith.mulf %10, %9 : vector<16x64xf32>
    %12 = arith.addf %7, %11 : vector<16x64xf32>
    %c2_11 = arith.constant 2 : index
    %c0_12 = arith.constant 0 : index
    %13 = vector.load %arg2[%c2_11, %c0_12] : memref<3x64xf32, #tpu.memory_space<vmem>>, vector<1x64xf32>
    %c2_13 = arith.constant 2 : index
    %c0_14 = arith.constant 0 : index
    %14 = vector.load %arg4[%c2_13, %c0_14] : memref<18x64xf32, #tpu.memory_space<vmem>>, vector<16x64xf32>
    %15 = vector.broadcast %13 : vector<1x64xf32> to vector<16x64xf32>
    %16 = arith.mulf %15, %14 : vector<16x64xf32>
    %17 = arith.addf %12, %16 : vector<16x64xf32>
    %c0_15 = arith.constant 0 : index
    %c0_16 = arith.constant 0 : index
    %18 = vector.load %arg3[%c0_15, %c0_16] : memref<16x64xf32, #tpu.memory_space<vmem>>, vector<16x64xf32>
    tpu.vector_store %arg3[%c0_15, %c0_16], %17 {strides = array<i32>} : memref<16x64xf32, #tpu.memory_space<vmem>>, vector<16x64xf32>,
    return
  }
  func.func @transform_0(%arg0: i32) -> (i32, i32) {
    %c0_i32 = arith.constant 0 : i32
    %c0_i32_0 = arith.constant 0 : i32
    return %c0_i32, %arg0 : i32, i32
  }
  func.func @transform_1(%arg0: i32) -> (i32, i32) {
    %c0_i32 = arith.constant 0 : i32
    %c0_i32_0 = arith.constant 0 : i32
    return %c0_i32, %arg0 : i32, i32
  }
  func.func @transform_2(%arg0: i32) -> (i32, i32) {
    %c0_i32 = arith.constant 0 : i32
    %c0_i32_0 = arith.constant 0 : i32
    return %c0_i32, %arg0 : i32, i32
  }
}

</mosaic_0001>

<bundles_post_ra>
// kernel: tile.9
= control target key start
LH: loop header
LB: loop body
LE: loop exit
PB: predicated region body
PF: predicated region fallthrough
CT: control target
= control target key end

     0   :  { %vm16_vm0 = vcmask 261120   ;;  %vm22_vm1 = vcmask 523520   ;;  %s57_s0 = inlined_call_operand.vmem [shape: f32[3,2,32], index: 0, kind: input, shape index: {}]   ;;  %s58_s1 = inlined_call_operand.vmem [shape: f32[3,64], index: 1, kind: output, shape index: {}]  }
   0x1   :  { %v31_v0 = vld [vmem:[%s57_s0 + $0x4] sm:$0x3]  ;;  %v32_v1 = vld [vmem:[%s57_s0 + $0x2] sm:$0x3]  ;;  %v13_v2 = vld [vmem:[%s57_s0] sm:$0x3] }
   0x2   :  { %8 = vst [vmem:[#allocation1 + $0x10] sm:$0x3] %v31_v0  ;;  %12 = vst [vmem:[#allocation1 + $0x8] sm:$0x3] %v32_v1  ;;  %s34_s0 = smov 32  }
   0x3   :  { %14 = vst [vmem:[#allocation1] sm:$0x3] %v13_v2 }
   0xa   :  { %v19_v3 = vld [vmem:[#allocation1 + $0x1] ss:$8 sm:$0x7]   ;;  %v15_v4 = vld [vmem:[#allocation1] ss:$8 sm:$0x7]  }
   0xb   :  { %20 = vrot.lane.b32.xlu0 %v19_v3, %s34_s0  ;;  %17 = vst.msk [vmem:[#allocation0] sm:$0x7] %vm16_vm0, %v15_v4  }
  0x7d   :  { %v21_v5 = vpop.permute.xlu0 %20  }
  0x7e   :  { %23 = vst.msk [vmem:[#allocation0] sm:$0x7] %vm22_vm1, %v21_v5  }
  0x85   :  { %v27_v6 = vld [vmem:[#allocation0] sm:$0xf] }
  0x86   :  { %29 = vst [vmem:[%s58_s1] sm:$0xf] %v27_v6 }

// kernel: lightconv_forward.1
= control target key start
LH: loop header
LB: loop body
LE: loop exit
PB: predicated region body
PF: predicated region fallthrough
CT: control target
= control target key end

     0   :  { %vm11_vm0 = vcmask 517120   ;;  %vm15_vm1 = vcmask 523264   ;;  %v59_v0 = vmov 0.0   ;;  %s100_s0 = inlined_call_operand.vmem [shape: f32[16,64], index: 0, kind: input, shape index: {}]   ;;  %s101_s1 = inlined_call_operand.vmem [shape: f32[3,64], index: 1, kind: input, shape index: {}]   ;;  %s102_s2 = inlined_call_operand.vmem [shape: f32[16,64], index: 2, kind: output, shape index: {}]  }
   0x1   :  { %12 = vst.msk [vmem:[#allocation2] sm:$0x3] %vm11_vm0, %v59_v0  ;;  %v13_v1 = vld [vmem:[%s100_s0] sm:$0xff]  ;;  %v14_v2 = vld [vmem:[%s100_s0 + $0x8] sm:$0xff] }
   0x2   :  { %16 = vst.msk [vmem:[#allocation2 + $0x2] sm:$0xff] %vm15_vm1, %v13_v1  ;;  %17 = vst.msk [vmem:[#allocation2 + $0xa] sm:$0xff] %vm15_vm1, %v14_v2  ;;  %v55_v3 = vld [vmem:[%s101_s1] ss:$0 sm:$0xff]  ;;  %v56_v4 = vld [vmem:[%s101_s1 + $0x1] ss:$0 sm:$0xff] }
   0x3   :  { %v57_v5 = vld [vmem:[%s101_s1 + $0x2] ss:$0 sm:$0xff] }
   0x9   :  { %v19_v6 = vld [vmem:[#allocation2] sm:$0xff]  ;;  %v20_v11 = vld [vmem:[#allocation2 + $0x8] sm:$0xff] }
   0xa   :  { %v28_v7 = vld [vmem:[#allocation2 + $0x1] sm:$0xff]  ;;  %v25_v9 = vmul.f32 %v55_v3, %v19_v6  ;;  %v29_v12 = vld [vmem:[#allocation2 + $0x9] sm:$0xff]  ;;  %v26_v14 = vmul.f32 %v55_v3, %v20_v11 }
   0xb   :  { %v39_v8 = vld [vmem:[#allocation2 + $0x2] sm:$0xff]  ;;  %v34_v10 = vmul.f32 %v56_v4, %v28_v7  ;;  %v40_v13 = vld [vmem:[#allocation2 + $0xa] sm:$0xff]  ;;  %v35_v15 = vmul.f32 %v56_v4, %v29_v12 }
   0xc   :  { %v45_v17 = vmul.f32 %v57_v5, %v39_v8  ;;  %v46_v19 = vmul.f32 %v57_v5, %v40_v13 }
   0xd   :  { %v36_v16 = vadd.f32 %v34_v10, %v25_v9  ;;  %v37_v18 = vadd.f32 %v35_v15, %v26_v14 }
   0xf   :  { %v47_v20 = vadd.f32 %v45_v17, %v36_v16  ;;  %v48_v21 = vadd.f32 %v46_v19, %v37_v18 }
  0x11   :  { %49 = vst.msk [vmem:[%s102_s2] sm:$0xff] %vm15_vm1, %v47_v20  ;;  %50 = vst.msk [vmem:[%s102_s2 + $0x8] sm:$0xff] %vm15_vm1, %v48_v21 }

</bundles_post_ra>
